<compile_context>
chip_gen: v7x
topology: tpu7x:2x2x1
jax: 0.10.0
libtpu: 0.0.40
codegen_flags: <defaults>
</compile_context>

<pallas_src>
import functools

import jax
import jax.numpy as jnp
from jax.experimental import pallas as pl
from jax.experimental.pallas import tpu as pltpu

IN_FEATURES = 2
IN_PAD = 8                # x padded to K=8 so layer 1 is one clean MXU pass
HIDDEN = 100
HIDDEN_PAD = 128          # lane-aligned hidden width
OUT = 4
NEG = -1e30               # bias pad for unused logit lanes -> exp() underflows to exactly 0


def policy_mlp_kernel(x_ref, w1_ref, b1_ref, w2_ref, b2_ref, w3_ref, b3_ref, out_ref):
    # Layer 1: Linear(2 -> 128) + ReLU.  x / w1 are zero-padded to K=8, so this is one
    # small f32 MXU pass with an identical result.
    h1 = jnp.dot(x_ref[...], w1_ref[...], preferred_element_type=jnp.float32) + b1_ref[...]
    h1 = jnp.maximum(h1, 0.0)                                  # (TM, 128) f32

    # Layer 2: Linear(128 -> 128) + ReLU.  bf16 on the MXU, f32 accumulate.
    h2 = jnp.dot(h1.astype(jnp.bfloat16), w2_ref[...],
                 preferred_element_type=jnp.float32) + b2_ref[...]
    h2 = jnp.maximum(h2, 0.0)                                  # (TM, 128) f32

    # Layer 3: Linear(128 -> 128-wide padded logits).  Padded columns have zero weights
    # and a -1e30 bias, so they never affect the softmax max/sum (exp underflows to 0).
    logits = jnp.dot(h2.astype(jnp.bfloat16), w3_ref[...],
                     preferred_element_type=jnp.float32) + b3_ref[...]

    # Numerically stable softmax over the lane axis (f32, exact divide so rows sum to 1).
    m = jnp.max(logits, axis=-1, keepdims=True)
    e = jnp.exp(logits - m)
    denom = jnp.sum(e, axis=-1, keepdims=True)
    # Only the 4 real action lanes are written back (16 B/row instead of 512 B/row).
    out_ref[...] = e[:, :OUT] / denom


def _pad_params(params):
    """Zero-pad: in 2->8, hidden 100->128, logits 4->128 (logit bias pad = -1e30).
    The two 128x128 weight matrices are stored in bf16; biases stay f32."""
    w1, b1, w2, b2, w3, b3 = params
    h_pad = HIDDEN_PAD - HIDDEN
    o_pad = HIDDEN_PAD - OUT
    w1p = jnp.pad(w1, ((0, IN_PAD - IN_FEATURES), (0, h_pad)))             # (8, 128)   f32
    b1p = jnp.pad(b1, ((0, 0), (0, h_pad)))                                # (1, 128)   f32
    w2p = jnp.pad(w2, ((0, h_pad), (0, h_pad))).astype(jnp.bfloat16)       # (128, 128) bf16
    b2p = jnp.pad(b2, ((0, 0), (0, h_pad)))                                # (1, 128)   f32
    w3p = jnp.pad(w3, ((0, h_pad), (0, o_pad))).astype(jnp.bfloat16)       # (128, 128) bf16
    b3p = jnp.pad(b3, ((0, 0), (0, o_pad)), constant_values=NEG)           # (1, 128)   f32
    return w1p, b1p, w2p, b2p, w3p, b3p


def _round_up(x, m):
    return (x + m - 1) // m * m


def _choose_tile(batch, tm_hint):
    """Batch tile: multiple of 16 (bf16 sublane packing), large enough to amortize the
    per-grid-step overhead, and — when there is enough work — an even grid of >= 2 steps
    so both v7x TensorCores are used (no-op on single-TC v5e/v6e)."""
    tm_hint = max(16, _round_up(int(tm_hint), 16))
    b16 = _round_up(batch, 16)
    if b16 < 32:                                   # too small to split across cores
        tile = b16
    elif b16 <= 2 * tm_hint:                       # mid-size: exactly 2 tiles
        tile = _round_up(pl.cdiv(b16, 2), 16)
    else:                                          # large: big tiles, even grid count
        n = pl.cdiv(b16, tm_hint)
        n += n % 2
        tile = _round_up(pl.cdiv(b16, n), 16)
    bp = _round_up(batch, tile)
    return tile, bp


@functools.partial(jax.jit, static_argnames=("tm",))
def policy_network_forward(x, params, *, tm=2048):
    """x: (B, 2) float32 -> (B, 4) action probabilities."""
    B = x.shape[0]
    padded = _pad_params(params)
    tile, bp = _choose_tile(B, tm)

    # Pad batch rows up to the grid extent and input features 2 -> 8 (zero pads).
    x = jnp.pad(x, ((0, bp - B), (0, IN_PAD - x.shape[1])))

    resident = lambda shape: pl.BlockSpec(shape, lambda i: (0, 0))  # weights stay in VMEM
    out = pl.pallas_call(
        policy_mlp_kernel,
        out_shape=jax.ShapeDtypeStruct((bp, OUT), jnp.float32),
        grid=(bp // tile,),
        in_specs=[
            pl.BlockSpec((tile, IN_PAD), lambda i: (i, 0)),
            resident((IN_PAD, HIDDEN_PAD)), resident((1, HIDDEN_PAD)),
            resident((HIDDEN_PAD, HIDDEN_PAD)), resident((1, HIDDEN_PAD)),
            resident((HIDDEN_PAD, HIDDEN_PAD)), resident((1, HIDDEN_PAD)),
        ],
        out_specs=pl.BlockSpec((tile, OUT), lambda i: (i, 0)),
        compiler_params=pltpu.CompilerParams(
            dimension_semantics=("parallel",),     # shard batch tiles across TCs on v7x
            vmem_limit_bytes=32 << 20,
        ),
    )(x, *padded)
    return out[:B]


def init_params(key):
    """Deterministic init mimicking nn.Linear's U(-1/sqrt(fan_in), 1/sqrt(fan_in))."""
    def linear(k, fan_in, fan_out):
        kw, kb = jax.random.split(k)
        bound = 1.0 / jnp.sqrt(jnp.float32(fan_in))
        # Stored as (in, out) so the kernel computes x @ W (PyTorch stores (out, in)).
        w = jax.random.uniform(kw, (fan_in, fan_out), jnp.float32, -bound, bound)
        b = jax.random.uniform(kb, (1, fan_out), jnp.float32, -bound, bound)
        return w, b

    k1, k2, k3 = jax.random.split(key, 3)
    w1, b1 = linear(k1, IN_FEATURES, HIDDEN)
    w2, b2 = linear(k2, HIDDEN, HIDDEN)
    w3, b3 = linear(k3, HIDDEN, OUT)
    return w1, b1, w2, b2, w3, b3


def reference_forward(x, params):
    """Pure-JAX f32 reference of the PyTorch stack."""
    w1, b1, w2, b2, w3, b3 = params
    h1 = jax.nn.relu(x @ w1 + b1)
    h2 = jax.nn.relu(h1 @ w2 + b2)
    return jax.nn.softmax(h2 @ w3 + b3, axis=-1)


if __name__ == "__main__":
    key = jax.random.PRNGKey(0)
    k_params, k_x1, k_x2 = jax.random.split(key, 3)

    params = init_params(k_params)

    # Small batch of 2-D states (single grid step).
    x_small = jax.random.normal(k_x1, (8, 2), jnp.float32)
    probs = jax.block_until_ready(policy_network_forward(x_small, params))
    ref = reference_forward(x_small, params)
    assert probs.shape == (8, 4)
    assert bool(jnp.all(jnp.abs(jnp.sum(probs, axis=-1) - 1.0) < 1e-4))
    # bf16 GEMMs with f32 accumulation -> loosened tolerance vs the f32 reference.
    assert bool(jnp.allclose(probs, ref, atol=2e-2, rtol=2e-2))

    # Larger, ragged batch: exercises batch padding, the 2-tile split, resident weights.
    x_big = jax.random.normal(k_x2, (260, 2), jnp.float32)
    probs_big = jax.block_until_ready(policy_network_forward(x_big, params))
    ref_big = reference_forward(x_big, params)
    assert probs_big.shape == (260, 4)
    assert bool(jnp.all(jnp.abs(jnp.sum(probs_big, axis=-1) - 1.0) < 1e-4))
    assert bool(jnp.allclose(probs_big, ref_big, atol=2e-2, rtol=2e-2))

    # Explicit small tile: multi-step grid path.
    probs_tiled = jax.block_until_ready(policy_network_forward(x_big, params, tm=64))
    assert bool(jnp.allclose(probs_tiled, ref_big, atol=2e-2, rtol=2e-2))

    print("KERNEL_OK")
</pallas_src>

<mosaic_0001>
module attributes {stable_mosaic.version = 11 : i64} {
  func.func @policy_mlp_kernel(%arg0: i32, %arg1: memref<16x8xf32, #tpu.memory_space<vmem>>, %arg2: memref<8x128xf32, #tpu.memory_space<vmem>>, %arg3: memref<1x128xf32, #tpu.memory_space<vmem>>, %arg4: memref<128x128xbf16, #tpu.memory_space<vmem>>, %arg5: memref<1x128xf32, #tpu.memory_space<vmem>>, %arg6: memref<128x128xbf16, #tpu.memory_space<vmem>>, %arg7: memref<1x128xf32, #tpu.memory_space<vmem>>, %arg8: memref<16x4xf32, #tpu.memory_space<vmem>>) attributes {dimension_semantics = [#tpu.dimension_semantics<parallel>], iteration_bounds = array<i64: 1>, scalar_prefetch = 0 : i64, scratch_operands = 0 : i64, tpu.core_type = #tpu.core_type<tc>, window_params = [{transform_indices = @transform_0, window_bounds = array<i64: 16, 8>}, {pipeline_mode = #tpu.pipeline_mode<synchronous>, transform_indices = @transform_1, window_bounds = array<i64: 8, 128>}, {pipeline_mode = #tpu.pipeline_mode<synchronous>, transform_indices = @transform_2, window_bounds = array<i64: 1, 128>}, {pipeline_mode = #tpu.pipeline_mode<synchronous>, transform_indices = @transform_3, window_bounds = array<i64: 128, 128>}, {pipeline_mode = #tpu.pipeline_mode<synchronous>, transform_indices = @transform_4, window_bounds = array<i64: 1, 128>}, {pipeline_mode = #tpu.pipeline_mode<synchronous>, transform_indices = @transform_5, window_bounds = array<i64: 128, 128>}, {pipeline_mode = #tpu.pipeline_mode<synchronous>, transform_indices = @transform_6, window_bounds = array<i64: 1, 128>}, {transform_indices = @transform_7, window_bounds = array<i64: 16, 4>}]} {
    %c0 = arith.constant 0 : index
    %c0_0 = arith.constant 0 : index
    %0 = vector.load %arg1[%c0, %c0_0] : memref<16x8xf32, #tpu.memory_space<vmem>>, vector<16x8xf32>
    %c0_1 = arith.constant 0 : index
    %c0_2 = arith.constant 0 : index
    %1 = vector.load %arg2[%c0_1, %c0_2] : memref<8x128xf32, #tpu.memory_space<vmem>>, vector<8x128xf32>
    %cst = arith.constant dense<0.000000e+00> : vector<16x128xf32>
    %2 = tpu.matmul %0, %1, %cst {dimension_numbers = #tpu.dot_dimension_numbers<[1], [0], [0], [1], [0, 0, 1, 1], [], []>} : vector<16x8xf32>, vector<8x128xf32>, vector<16x128xf32> -> vector<16x128xf32>
    %c0_3 = arith.constant 0 : index
    %c0_4 = arith.constant 0 : index
    %3 = vector.load %arg3[%c0_3, %c0_4] : memref<1x128xf32, #tpu.memory_space<vmem>>, vector<1x128xf32>
    %4 = vector.broadcast %3 : vector<1x128xf32> to vector<16x128xf32>
    %5 = arith.addf %2, %4 : vector<16x128xf32>
    %cst_5 = arith.constant 0.000000e+00 : f32
    %6 = vector.broadcast %cst_5 : f32 to vector<16x128xf32>
    %7 = arith.maximumf %5, %6 : vector<16x128xf32>
    %8 = arith.truncf %7 : vector<16x128xf32> to vector<16x128xbf16>
    %c0_6 = arith.constant 0 : index
    %c0_7 = arith.constant 0 : index
    %9 = vector.load %arg4[%c0_6, %c0_7] : memref<128x128xbf16, #tpu.memory_space<vmem>>, vector<128x128xbf16>
    %cst_8 = arith.constant dense<0.000000e+00> : vector<16x128xf32>
    %10 = tpu.matmul %8, %9, %cst_8 {dimension_numbers = #tpu.dot_dimension_numbers<[1], [0], [0], [1], [0, 0, 1, 1], [], []>} : vector<16x128xbf16>, vector<128x128xbf16>, vector<16x128xf32> -> vector<16x128xf32>
    %c0_9 = arith.constant 0 : index
    %c0_10 = arith.constant 0 : index
    %11 = vector.load %arg5[%c0_9, %c0_10] : memref<1x128xf32, #tpu.memory_space<vmem>>, vector<1x128xf32>
    %12 = vector.broadcast %11 : vector<1x128xf32> to vector<16x128xf32>
    %13 = arith.addf %10, %12 : vector<16x128xf32>
    %cst_11 = arith.constant 0.000000e+00 : f32
    %14 = vector.broadcast %cst_11 : f32 to vector<16x128xf32>
    %15 = arith.maximumf %13, %14 : vector<16x128xf32>
    %16 = arith.truncf %15 : vector<16x128xf32> to vector<16x128xbf16>
    %c0_12 = arith.constant 0 : index
    %c0_13 = arith.constant 0 : index
    %17 = vector.load %arg6[%c0_12, %c0_13] : memref<128x128xbf16, #tpu.memory_space<vmem>>, vector<128x128xbf16>
    %cst_14 = arith.constant dense<0.000000e+00> : vector<16x128xf32>
    %18 = tpu.matmul %16, %17, %cst_14 {dimension_numbers = #tpu.dot_dimension_numbers<[1], [0], [0], [1], [0, 0, 1, 1], [], []>} : vector<16x128xbf16>, vector<128x128xbf16>, vector<16x128xf32> -> vector<16x128xf32>
    %c0_15 = arith.constant 0 : index
    %c0_16 = arith.constant 0 : index
    %19 = vector.load %arg7[%c0_15, %c0_16] : memref<1x128xf32, #tpu.memory_space<vmem>>, vector<1x128xf32>
    %20 = vector.broadcast %19 : vector<1x128xf32> to vector<16x128xf32>
    %21 = arith.addf %18, %20 : vector<16x128xf32>
    %cst_17 = arith.constant dense<0xFF800000> : vector<16xf32>
    %22 = vector.multi_reduction <maximumf>, %21, %cst_17 [1] : vector<16x128xf32> to vector<16xf32>
    %23 = vector.shape_cast %22 : vector<16xf32> to vector<16x1xf32>
    %24 = vector.broadcast %23 : vector<16x1xf32> to vector<16x128xf32>
    %25 = arith.subf %21, %24 : vector<16x128xf32>
    %26 = math.exp %25 : vector<16x128xf32>
    %cst_18 = arith.constant dense<0.000000e+00> : vector<16xf32>
    %27 = vector.multi_reduction <add>, %26, %cst_18 [1] : vector<16x128xf32> to vector<16xf32>
    %28 = vector.shape_cast %27 : vector<16xf32> to vector<16x1xf32>
    %29 = vector.extract_strided_slice %26 {offsets = [0, 0], sizes = [16, 4], strides = [1, 1]} : vector<16x128xf32> to vector<16x4xf32>
    %30 = vector.broadcast %28 : vector<16x1xf32> to vector<16x4xf32>
    %31 = arith.divf %29, %30 : vector<16x4xf32>
    %c0_19 = arith.constant 0 : index
    %c0_20 = arith.constant 0 : index
    %32 = vector.load %arg8[%c0_19, %c0_20] : memref<16x4xf32, #tpu.memory_space<vmem>>, vector<16x4xf32>
    tpu.vector_store %arg8[%c0_19, %c0_20], %31 {strides = array<i32>} : memref<16x4xf32, #tpu.memory_space<vmem>>, vector<16x4xf32>,
    return
  }
  func.func @transform_0(%arg0: i32) -> (i32, i32) {
    %c0_i32 = arith.constant 0 : i32
    %c0_i32_0 = arith.constant 0 : i32
    return %arg0, %c0_i32 : i32, i32
  }
  func.func @transform_1(%arg0: i32) -> (i32, i32) {
    %c0_i32 = arith.constant 0 : i32
    %c0_i32_0 = arith.constant 0 : i32
    %c0_i32_1 = arith.constant 0 : i32
    return %c0_i32, %c0_i32_0 : i32, i32
  }
  func.func @transform_2(%arg0: i32) -> (i32, i32) {
    %c0_i32 = arith.constant 0 : i32
    %c0_i32_0 = arith.constant 0 : i32
    %c0_i32_1 = arith.constant 0 : i32
    return %c0_i32, %c0_i32_0 : i32, i32
  }
  func.func @transform_3(%arg0: i32) -> (i32, i32) {
    %c0_i32 = arith.constant 0 : i32
    %c0_i32_0 = arith.constant 0 : i32
    %c0_i32_1 = arith.constant 0 : i32
    return %c0_i32, %c0_i32_0 : i32, i32
  }
  func.func @transform_4(%arg0: i32) -> (i32, i32) {
    %c0_i32 = arith.constant 0 : i32
    %c0_i32_0 = arith.constant 0 : i32
    %c0_i32_1 = arith.constant 0 : i32
    return %c0_i32, %c0_i32_0 : i32, i32
  }
  func.func @transform_5(%arg0: i32) -> (i32, i32) {
    %c0_i32 = arith.constant 0 : i32
    %c0_i32_0 = arith.constant 0 : i32
    %c0_i32_1 = arith.constant 0 : i32
    return %c0_i32, %c0_i32_0 : i32, i32
  }
  func.func @transform_6(%arg0: i32) -> (i32, i32) {
    %c0_i32 = arith.constant 0 : i32
    %c0_i32_0 = arith.constant 0 : i32
    %c0_i32_1 = arith.constant 0 : i32
    return %c0_i32, %c0_i32_0 : i32, i32
  }
  func.func @transform_7(%arg0: i32) -> (i32, i32) {
    %c0_i32 = arith.constant 0 : i32
    %c0_i32_0 = arith.constant 0 : i32
    return %arg0, %c0_i32 : i32, i32
  }
}

</mosaic_0001>

<bundles_post_ra>
// kernel: policy_network_forward.1
= control target key start
LH: loop header
LB: loop body
LE: loop exit
PB: predicated region body
PF: predicated region fallthrough
CT: control target
= control target key end

     0   :  { %vm37_vm0 = vcmask 64512   ;;  %v487_v3 = vmov 0.0   ;;  %vm488_vm1 = vmmov 0   ;;  %vm367_vm2 = vcmask 31744   ;;  %s619_s1 = inlined_call_operand.vmem [shape: f32[8,128], index: 1, kind: input, shape index: {}]   ;;  %s620_s0 = inlined_call_operand.vmem [shape: f32[16,8], index: 0, kind: input, shape index: {}]   ;;  %s621_s3 = inlined_call_operand.vmem [shape: bf16[128,128], index: 3, kind: input, shape index: {}]   ;;  %s622_s5 = inlined_call_operand.vmem [shape: bf16[128,128], index: 5, kind: input, shape index: {}]   ;;  %s623_s2 = inlined_call_operand.vmem [shape: f32[1,128], index: 2, kind: input, shape index: {}]   ;;  %s624_s4 = inlined_call_operand.vmem [shape: f32[1,128], index: 4, kind: input, shape index: {}]   ;;  %s625_s6 = inlined_call_operand.vmem [shape: f32[1,128], index: 6, kind: input, shape index: {}]   ;;  %s626_s7 = inlined_call_operand.vmem [shape: f32[16,4], index: 7, kind: output, shape index: {}]  }
   0x1   :  { %v29_v0 = vld [vmem:[%s619_s1] sm:$0xff]  ;;  %v28_v2 = vld [vmem:[%s620_s0 + $0x8] sm:$0xff]  ;;  %421 = vmatprep.subr.bf16.mxu1 %v487_v3  ;;  %v465_v6 = vld [vmem:[%s621_s3 + $0x10] sm:$0xff]   ;;  %437 = vmatprep.mubr.msk.bf16.mxu1 %vm488_vm1, %v487_v3 }
   0x2   :  { %v27_v1 = vld [vmem:[%s620_s0] sm:$0xff]  ;;  %416 = vmatprep.subr.mxu0 %v29_v0  ;;  %v464_v5 = vld [vmem:[%s621_s3 + $0x8] sm:$0xff]   ;;  %v466_v7 = vld [vmem:[%s621_s3 + $0x18] sm:$0xff]  }
   0x3   :  { %418 = vmatprep.mubr.msk.f32.mxu0 %vm37_vm0, %v27_v1  ;;  %v463_v4 = vld [vmem:[%s621_s3] sm:$0xff]   ;;  %417 = vmatpush3.msra.mxu0 %v29_v0  ;;  %v468_v9 = vld [vmem:[%s621_s3 + $0x28] sm:$0xff]   ;;  %v469_v10 = vld [vmem:[%s621_s3 + $0x30] sm:$0xff]  }
   0x4   :  { %419 = vmatmul.mubr.msk.f32.vlgmr.msra.gmra.mrb[0].mxu0 %vm37_vm0, %v28_v2  ;;  %422 = vmatpush3.bf16.msra.mxu1 %v463_v4  ;;  %v467_v8 = vld [vmem:[%s621_s3 + $0x20] sm:$0xff]   ;;  %v470_v11 = vld [vmem:[%s621_s3 + $0x38] sm:$0xff]   ;;  %v472_v13 = vld [vmem:[%s622_s5 + $0x8] sm:$0xff]  }
   0x5   :  { %423 = vmatprep.subr.bf16.mxu1 %v487_v3  ;;  %441 = vmatprep.subr.bf16.mxu0 %v487_v3  ;;  %v471_v12 = vld [vmem:[%s622_s5] sm:$0xff]   ;;  %v473_v14 = vld [vmem:[%s622_s5 + $0x10] sm:$0xff]   ;;  %v474_v15 = vld [vmem:[%s622_s5 + $0x18] sm:$0xff]  }
   0x6   :  { %457 = vmatprep.mubr.msk.bf16.mxu0 %vm488_vm1, %v487_v3  ;;  %442 = vmatpush3.bf16.msra.mxu0 %v471_v12  ;;  %v475_v16 = vld [vmem:[%s622_s5 + $0x20] sm:$0xff]   ;;  %v476_v17 = vld [vmem:[%s622_s5 + $0x28] sm:$0xff]   ;;  %v477_v26 = vld [vmem:[%s622_s5 + $0x30] sm:$0xff]  }
   0x7   :  { %443 = vmatprep.subr.bf16.mxu0 %v487_v3  ;;  %v374_v18 = vld [vmem:[%s623_s2] ss:$0 sm:$0xff]  ;;  %v478_v27 = vld [vmem:[%s622_s5 + $0x38] sm:$0xff]  }
   0x8   :  { %424 = vmatpush3.bf16.msra.mxu1 %v464_v5  ;;  %v377_v28 = vld [vmem:[%s624_s4] ss:$0 sm:$0xff] }
   0x9   :  { %425 = vmatprep.subr.bf16.mxu1 %v487_v3  ;;  %v386_v38 = vld [vmem:[%s625_s6] ss:$0 sm:$0xff] }
   0xa   :  { %444 = vmatpush3.bf16.msra.mxu0 %v472_v13 }
   0xb   :  { %445 = vmatprep.subr.bf16.mxu0 %v487_v3 }
   0xc   :  { %426 = vmatpush3.bf16.msra.mxu1 %v465_v6 }
   0xd   :  { %427 = vmatprep.subr.bf16.mxu1 %v487_v3 }
   0xe   :  { %446 = vmatpush3.bf16.msra.mxu0 %v473_v14 }
   0xf   :  { %447 = vmatprep.subr.bf16.mxu0 %v487_v3 }
  0x10   :  { %428 = vmatpush3.bf16.msra.mxu1 %v466_v7 }
  0x11   :  { %429 = vmatprep.subr.bf16.mxu1 %v487_v3 }
  0x12   :  { %448 = vmatpush3.bf16.msra.mxu0 %v474_v15 }
  0x13   :  { %449 = vmatprep.subr.bf16.mxu0 %v487_v3 }
  0x14   :  { %430 = vmatpush3.bf16.msra.mxu1 %v467_v8 }
  0x15   :  { %431 = vmatprep.subr.bf16.mxu1 %v487_v3 }
  0x16   :  { %450 = vmatpush3.bf16.msra.mxu0 %v475_v16 }
  0x17   :  { %451 = vmatprep.subr.bf16.mxu0 %v487_v3 }
  0x18   :  { %432 = vmatpush3.bf16.msra.mxu1 %v468_v9 }
  0x19   :  { %433 = vmatprep.subr.bf16.mxu1 %v487_v3 }
  0x1a   :  { %452 = vmatpush3.bf16.msra.mxu0 %v476_v17 }
  0x1b   :  { %453 = vmatprep.subr.bf16.mxu0 %v487_v3 }
  0x1c   :  { %434 = vmatpush3.bf16.msra.mxu1 %v469_v10 }
  0x1d   :  { %435 = vmatprep.subr.bf16.mxu1 %v487_v3 }
  0x1e   :  { %454 = vmatpush3.bf16.msra.mxu0 %v477_v26 }
  0x1f   :  { %455 = vmatprep.subr.bf16.mxu0 %v487_v3 }
  0x20   :  { %436 = vmatpush3.bf16.msra.mxu1 %v470_v11 }
  0x22   :  { %456 = vmatpush3.bf16.msra.mxu0 %v478_v27 }
  0xd7   :  { %v420_v19 = vpop.f32.mrb[0].mxu0 }
  0xd8   :  { %v116_v20 = vadd.f32 %v420_v19, %v374_v18  ;;  %v110_v21 = vpop.f32.mrb[1].mxu0 }
  0xd9   :  { %v111_v22 = vadd.f32 %v374_v18, %v110_v21 }
  0xda   :  { %v120_v23 = vmax.f32 %v116_v20, 0.0 }
  0xdb   :  { %v119_v24 = vmax.f32 %v111_v22, 0.0 }
  0xdd   :  { %v121_v25 = vpack.c.bf16 %v120_v23, %v119_v24 }
  0xdf   :  { %438 = vmatmul.mubr.bf16.vlgmr.msra.gmra.mrb[0].mxu1 %v121_v25 }
 0x1b2   :  { %v227_v29 = vpop.f32.mrb[0].mxu1 }
 0x1b3   :  { %v228_v30 = vadd.f32 %v377_v28, %v227_v29  ;;  %v439_v31 = vpop.f32.mrb[1].mxu1 }
 0x1b4   :  { %v230_v32 = vpop.f32.mrb[2].mxu1 }
 0x1b5   :  { %v231_v33 = vadd.f32 %v377_v28, %v230_v32  ;;  %v440_v34 = vpop.f32.mrb[3].mxu1  ;;  %v234_v35 = vmax.f32 %v228_v30, 0.0 }
 0x1b7   :  { %v235_v36 = vmax.f32 %v231_v33, 0.0 }
 0x1b9   :  { %v236_v37 = vpack.c.bf16 %v235_v36, %v234_v35 }
 0x1bb   :  { %458 = vmatmul.mubr.bf16.vlgmr.msra.gmra.mrb[4].mxu0 %v236_v37 }
 0x28e   :  { %v342_v39 = vpop.f32.mrb[4].mxu0 }
 0x28f   :  { %v343_v40 = vadd.f32 %v386_v38, %v342_v39  ;;  %v459_v41 = vpop.f32.mrb[5].mxu0 }
 0x290   :  { %v345_v42 = vpop.f32.mrb[6].mxu0 }
 0x291   :  { %349 = vmax.xlane.f32.xlu0 %v343_v40  ;;  %v460_v43 = vpop.f32.mrb[7].mxu0  ;;  %v346_v44 = vadd.f32 %v386_v38, %v345_v42 }
 0x295   :  { %351 = vmax.xlane.f32.xlu0 %v346_v44 }
 0x31e   :  { %v350_v45 = vpop.xlane.xlu0 %349 }
 0x31f   :  { %v353_v46 = vsub.f32 %v343_v40, %v350_v45 }
 0x321   :  { %v355_v47 = vmul.f32 1.442695, %v353_v46 }
 0x322   :  { %v352_v48 = vpop.xlane.xlu0 %351 }
 0x323   :  { %479 = vpow2.f32 %v355_v47  ;;  %v354_v49 = vsub.f32 %v346_v44, %v352_v48 }
 0x325   :  { %v357_v50 = vmul.f32 1.442695, %v354_v49 }
 0x327   :  { %481 = vpow2.f32 %v357_v50 }
 0x32d   :  { %v480_v51 = vpop.eup %479 }
 0x32e   :  { %359 = vadd.xlane.f32.xlu1 %v480_v51 }
 0x331   :  { %v482_v52 = vpop.eup %481 }
 0x332   :  { %361 = vadd.xlane.f32.xlu1 %v482_v52 }
 0x3bb   :  { %v360_v53 = vpop.xlane.xlu1 %359 }
 0x3bc   :  { %483 = vrcp.f32 %v360_v53 }
 0x3bf   :  { %v362_v54 = vpop.xlane.xlu1 %361 }
 0x3c0   :  { %485 = vrcp.f32 %v362_v54 }
 0x3c6   :  { %v484_v55 = vpop.eup %483 }
 0x3c7   :  { %v364_v56 = vmul.f32 %v484_v55, %v480_v51 }
 0x3c9   :  { %368 = vst.msk [vmem:[%s626_s7] sm:$0xff] %vm367_vm2, %v364_v56 }
 0x3ca   :  { %v486_v57 = vpop.eup %485 }
 0x3cb   :  { %v366_v58 = vmul.f32 %v486_v57, %v482_v52 }
 0x3cd   :  { %369 = vst.msk [vmem:[%s626_s7 + $0x8] sm:$0xff] %vm367_vm2, %v366_v58 }

</bundles_post_ra>
